<compile_context>
chip_gen: v7x
topology: tpu7x:2x2x1
jax: 0.10.0
libtpu: 0.0.40
codegen_flags: <defaults>
</compile_context>

<pallas_src>
import functools
import math

import numpy as np

import jax
import jax.numpy as jnp
from jax import lax
from jax.experimental import pallas as pl
from jax.experimental.pallas import tpu as pltpu


_NEG_INF = -1e30  # large finite negative: avoids NaN from (-inf) - (-inf)


def _mask_attention_kernel(q_ref, kt_ref, v_ref, o_ref, *,
                           H, E, D, scale, mask_flag, L_real):
    """One (batch, q-tile) grid step, all H heads.

    q_ref : [block_q, H*E]                 queries (lane-dense)
    kt_ref: [num_k_tiles, H*E, block_k]    keys, pre-transposed, key-tile major
    v_ref : [num_k_tiles, block_k, H*D]    values, key-tile major
    o_ref : [block_q, H*D]                 output (lane-dense, full-width store)
    """
    block_q = q_ref.shape[0]
    num_k_tiles, _, block_k = kt_ref.shape
    L_pad = num_k_tiles * block_k
    q_start = pl.program_id(1) * block_q

    # Softmax scale folded into Q once, full 128-lane width (one VPU pass),
    # per-head slices hoisted out of the key-tile loop.
    q_scaled = q_ref[...] * scale
    q_heads = [q_scaled[:, h * E:(h + 1) * E] for h in range(H)]

    # Causal block skipping: only key tiles with k_start < q_start + block_q
    # contribute; later tiles are never loaded from VMEM nor computed.
    if num_k_tiles == 1:
        n_k = 1
    elif mask_flag:
        n_k = jnp.minimum((q_start + block_q + block_k - 1) // block_k,
                          num_k_tiles)
    else:
        n_k = num_k_tiles

    # Row / column index bases hoisted out of the key-tile loop.
    rows = q_start + lax.broadcasted_iota(jnp.int32, (block_q, block_k), 0)
    cols0 = lax.broadcasted_iota(jnp.int32, (block_q, block_k), 1)
    # Padded key columns only need explicit masking when there is no causal
    # mask (with the causal mask, pad cols have col >= L_real > row).
    pad_mask_needed = (L_pad != L_real) and (not mask_flag)

    def kv_tile_update(j, carry):
        ms, ls, accs = carry
        k_start = j * block_k
        cols = cols0 + k_start

        masked = None
        if mask_flag:
            masked = cols > rows            # torch.triu(ones, diagonal=1)
        if pad_mask_needed:
            pm = cols >= L_real
            masked = pm if masked is None else (masked | pm)

        new_ms, new_ls, new_accs = [], [], []
        for h in range(H):                  # H small & static -> unrolled
            # Leading-dim tile index + static sublane/lane slices (cheap).
            k_h = kt_ref[j, h * E:(h + 1) * E, :]     # [E, block_k]
            v_h = v_ref[j, :, h * D:(h + 1) * D]      # [block_k, D]

            # (scale*Q_h) @ K_h^T as a plain NN matmul (K pre-transposed in
            # HBM), MXU with f32 accumulation.
            s = jnp.dot(q_heads[h], k_h,
                        preferred_element_type=jnp.float32)  # [bq, bk] f32
            if masked is not None:
                s = jnp.where(masked, _NEG_INF, s)

            # Online softmax (f32 throughout).
            m_prev, l_prev, a_prev = ms[h], ls[h], accs[h]
            m_new = jnp.maximum(m_prev, jnp.max(s, axis=-1, keepdims=True))
            alpha = jnp.exp(m_prev - m_new)
            p = jnp.exp(s - m_new)                            # EUP
            l_new = alpha * l_prev + jnp.sum(p, axis=-1, keepdims=True)
            a_new = alpha * a_prev + jnp.dot(
                p.astype(v_h.dtype), v_h, preferred_element_type=jnp.float32)

            new_ms.append(m_new)
            new_ls.append(l_new)
            new_accs.append(a_new)
        return tuple(new_ms), tuple(new_ls), tuple(new_accs)

    init = (
        tuple(jnp.full((block_q, 1), _NEG_INF, jnp.float32) for _ in range(H)),
        tuple(jnp.zeros((block_q, 1), jnp.float32) for _ in range(H)),
        tuple(jnp.zeros((block_q, D), jnp.float32) for _ in range(H)),
    )
    _, ls, accs = lax.fori_loop(0, n_k, kv_tile_update, init)

    # Exact normalization (the approximate EUP reciprocal was outside the
    # accuracy budget).  l > 0 always for the causal mask (diagonal unmasked).
    outs = [accs[h] / ls[h] for h in range(H)]

    # TODO(synk): training-mode attention dropout (p=0.1) would go here.
    # One lane-dense, full-width (H*D) output store of all heads.
    o_ref[...] = jnp.concatenate(outs, axis=-1).astype(o_ref.dtype)


def _round_up(x, m):
    return (x + m - 1) // m * m


def _choose_tiling(L):
    """Returns (block_q, block_k, L_pad)."""
    if L <= 128:
        # Short sequence: a single key tile, single q tile (sublane aligned).
        lp = _round_up(L, 8)
        return lp, lp, lp
    # Flash tiling: [block_q, block_k] f32 temps stay ~64 KiB regardless of L,
    # which keeps the working set inside v7x's 64 MiB VMEM for long sequences.
    return 128, 128, _round_up(L, 128)


def mask_attention(queries, keys, values, mask_flag=True, mask_typ="Triangular"):
    """queries/keys: [B, L, H, E], values: [B, L, H, D] -> ([B, L, H, D], None)"""
    B, L, H, E = queries.shape
    D = values.shape[-1]
    scale = 1.0 / math.sqrt(E)

    if mask_flag and mask_typ != "Triangular":
        # TODO(synk): other static mask types (LocalLog, LocalSymmetry, ...)
        # would be precomputed host-side and DMA'd; only the default causal
        # mask is generated in-kernel here.
        raise NotImplementedError(mask_typ)

    block_q, block_k, L_pad = _choose_tiling(L)
    num_k_tiles = L_pad // block_k
    num_q_tiles = L_pad // block_q

    # Metadata-only reshapes (last two dims contiguous): lane-dense layout.
    q2 = queries.reshape(B, L, H * E)
    k2 = keys.reshape(B, L, H * E)
    v2 = values.reshape(B, L, H * D)

    if L_pad != L:
        pad = ((0, 0), (0, L_pad - L), (0, 0))
        q2 = jnp.pad(q2, pad)
        k2 = jnp.pad(k2, pad)
        v2 = jnp.pad(v2, pad)

    # One cheap O(B*L*H*E) HBM-side transpose of K (key-tile major), so the
    # in-kernel QK^T is a plain NN matmul and key tiles are leading-dim slabs.
    kt4 = jnp.transpose(k2.reshape(B, num_k_tiles, block_k, H * E),
                        (0, 1, 3, 2))                    # [B, nk, H*E, block_k]
    v4 = v2.reshape(B, num_k_tiles, block_k, H * D)      # [B, nk, block_k, H*D]

    # Explicit VMEM budget: K^T + V resident per batch (x2 double-buffering),
    # Q/out tiles (x2), f32 score temps + accumulators, with 2x headroom.
    # Clamped to a range valid on every generation.
    f32 = 4
    kv_resident = 2 * 2 * L_pad * (H * E) * f32
    qo_tiles = 2 * 2 * block_q * (H * max(E, D)) * f32
    temps = 8 * block_q * block_k * f32 + H * block_q * (D + 2) * f32
    vmem_limit = int(2 * (kv_resident + qo_tiles + temps)) + (4 << 20)
    vmem_limit = max(16 << 20, min(vmem_limit, 64 << 20))

    kernel = functools.partial(
        _mask_attention_kernel,
        H=H, E=E, D=D, scale=scale, mask_flag=mask_flag, L_real=L)

    out = pl.pallas_call(
        kernel,
        out_shape=jax.ShapeDtypeStruct((B, L_pad, H * D), queries.dtype),
        grid_spec=pltpu.PrefetchScalarGridSpec(
            num_scalar_prefetch=0,
            grid=(B, num_q_tiles),
            in_specs=[
                pl.BlockSpec((None, block_q, H * E), lambda b, qi: (b, qi, 0)),
                # K^T / V block indices depend only on b -> DMA'd once per
                # batch and reused across all q tiles.
                # TODO(synk): pipeline_mode=pl.Buffered(1) would halve their
                # VMEM footprint on v7x; kept default-buffered for portability
                # and accounted for in vmem_limit instead.
                pl.BlockSpec((None, num_k_tiles, H * E, block_k),
                             lambda b, qi: (b, 0, 0, 0)),
                pl.BlockSpec((None, num_k_tiles, block_k, H * D),
                             lambda b, qi: (b, 0, 0, 0)),
            ],
            out_specs=pl.BlockSpec((None, block_q, H * D),
                                   lambda b, qi: (b, qi, 0)),
        ),
        compiler_params=pltpu.CompilerParams(
            dimension_semantics=("parallel", "parallel"),
            vmem_limit_bytes=vmem_limit),
    )(q2, kt4, v4)

    attn_values = out[:, :L, :].reshape(B, L, H, D)  # drop pad rows (free-ish)
    return attn_values, None                         # output_attention=False


def _reference(queries, keys, values):
    B, L, H, E = queries.shape
    scale = 1.0 / math.sqrt(E)
    q = jnp.transpose(queries, (0, 2, 1, 3))
    k = jnp.transpose(keys, (0, 2, 3, 1))
    scores = jnp.matmul(q, k) * scale
    mask = jnp.triu(jnp.ones((L, L), dtype=bool), k=1)
    scores = jnp.where(mask[None, None], -jnp.inf, scores)
    probs = jax.nn.softmax(scores, axis=-1)
    v = jnp.transpose(values, (0, 2, 1, 3))
    out = jnp.matmul(probs, v)
    return jnp.transpose(out, (0, 2, 1, 3))


def _run_case(B, L, H, E, D):
    key = jax.random.PRNGKey(0)
    kq, kk, kv = jax.random.split(key, 3)
    queries = jax.random.normal(kq, (B, L, H, E), dtype=jnp.float32)
    keys = jax.random.normal(kk, (B, L, H, E), dtype=jnp.float32)
    values = jax.random.normal(kv, (B, L, H, D), dtype=jnp.float32)

    attn_values, attn_map = mask_attention(queries, keys, values)
    attn_values = jax.block_until_ready(attn_values)

    ref = jax.block_until_ready(_reference(queries, keys, values))
    np.testing.assert_allclose(np.asarray(attn_values), np.asarray(ref),
                               rtol=1e-3, atol=1e-3)
    assert attn_values.shape == (B, L, H, D)
    assert attn_map is None


if __name__ == "__main__":
    # Module-native small shape: [B, L, H, E] with E = D (single-tile path).
    _run_case(B=2, L=8, H=4, E=32, D=32)
    # Tiled path: flash KV loop + causal block skipping across 2 q/k tiles.
    _run_case(B=2, L=256, H=4, E=32, D=32)
    # Non-multiple sequence length: padded tail, pad rows/cols handled.
    _run_case(B=1, L=200, H=4, E=32, D=32)
    print("KERNEL_OK")
</pallas_src>

<mosaic_0001>
module attributes {stable_mosaic.version = 11 : i64} {
  func.func @_mask_attention_kernel(%arg0: i32, %arg1: i32, %arg2: memref<1x8x128xf32, #tpu.memory_space<vmem>>, %arg3: memref<1x1x128x8xf32, #tpu.memory_space<vmem>>, %arg4: memref<1x1x8x128xf32, #tpu.memory_space<vmem>>, %arg5: memref<1x8x128xf32, #tpu.memory_space<vmem>>) attributes {dimension_semantics = [#tpu.dimension_semantics<parallel>, #tpu.dimension_semantics<parallel>], iteration_bounds = array<i64: 2, 1>, scalar_prefetch = 0 : i64, scratch_operands = 0 : i64, tpu.core_type = #tpu.core_type<tc>, window_params = [{transform_indices = @transform_0, window_bounds = array<i64: 1, 8, 128>}, {transform_indices = @transform_1, window_bounds = array<i64: 1, 1, 128, 8>}, {transform_indices = @transform_2, window_bounds = array<i64: 1, 1, 8, 128>}, {transform_indices = @transform_3, window_bounds = array<i64: 1, 8, 128>}]} {
    %c8_i32 = arith.constant 8 : i32
    %0 = arith.muli %arg1, %c8_i32 : i32
    %c0 = arith.constant 0 : index
    %c0_0 = arith.constant 0 : index
    %c0_1 = arith.constant 0 : index
    %1 = vector.load %arg2[%c0, %c0_0, %c0_1] : memref<1x8x128xf32, #tpu.memory_space<vmem>>, vector<1x8x128xf32>
    %2 = vector.shape_cast %1 : vector<1x8x128xf32> to vector<8x128xf32>
    %cst = arith.constant 0.176776692 : f32
    %3 = vector.broadcast %cst : f32 to vector<8x128xf32>
    %4 = arith.mulf %2, %3 : vector<8x128xf32>
    %5 = vector.extract_strided_slice %4 {offsets = [0, 0], sizes = [8, 32], strides = [1, 1]} : vector<8x128xf32> to vector<8x32xf32>
    %6 = vector.extract_strided_slice %4 {offsets = [0, 32], sizes = [8, 32], strides = [1, 1]} : vector<8x128xf32> to vector<8x32xf32>
    %7 = vector.extract_strided_slice %4 {offsets = [0, 64], sizes = [8, 32], strides = [1, 1]} : vector<8x128xf32> to vector<8x32xf32>
    %8 = vector.extract_strided_slice %4 {offsets = [0, 96], sizes = [8, 32], strides = [1, 1]} : vector<8x128xf32> to vector<8x32xf32>
    %9 = tpu.iota {dimensions = array<i32: 0>} : vector<8x8xi32>
    %10 = vector.broadcast %0 : i32 to vector<8x8xi32>
    %11 = arith.addi %10, %9 : vector<8x8xi32>
    %12 = tpu.iota {dimensions = array<i32: 1>} : vector<8x8xi32>
    %cst_2 = arith.constant -1.000000e+30 : f32
    %13 = vector.broadcast %cst_2 : f32 to vector<8x1xf32>
    %cst_3 = arith.constant -1.000000e+30 : f32
    %14 = vector.broadcast %cst_3 : f32 to vector<8x1xf32>
    %cst_4 = arith.constant -1.000000e+30 : f32
    %15 = vector.broadcast %cst_4 : f32 to vector<8x1xf32>
    %cst_5 = arith.constant -1.000000e+30 : f32
    %16 = vector.broadcast %cst_5 : f32 to vector<8x1xf32>
    %cst_6 = arith.constant 0.000000e+00 : f32
    %17 = vector.broadcast %cst_6 : f32 to vector<8x1xf32>
    %cst_7 = arith.constant 0.000000e+00 : f32
    %18 = vector.broadcast %cst_7 : f32 to vector<8x1xf32>
    %cst_8 = arith.constant 0.000000e+00 : f32
    %19 = vector.broadcast %cst_8 : f32 to vector<8x1xf32>
    %cst_9 = arith.constant 0.000000e+00 : f32
    %20 = vector.broadcast %cst_9 : f32 to vector<8x1xf32>
    %cst_10 = arith.constant 0.000000e+00 : f32
    %21 = vector.broadcast %cst_10 : f32 to vector<8x32xf32>
    %cst_11 = arith.constant 0.000000e+00 : f32
    %22 = vector.broadcast %cst_11 : f32 to vector<8x32xf32>
    %cst_12 = arith.constant 0.000000e+00 : f32
    %23 = vector.broadcast %cst_12 : f32 to vector<8x32xf32>
    %cst_13 = arith.constant 0.000000e+00 : f32
    %24 = vector.broadcast %cst_13 : f32 to vector<8x32xf32>
    %c0_i32 = arith.constant 0 : i32
    %c8_i32_14 = arith.constant 8 : i32
    %25 = arith.muli %c0_i32, %c8_i32_14 : i32
    %26 = vector.broadcast %25 : i32 to vector<8x8xi32>
    %27 = arith.addi %12, %26 : vector<8x8xi32>
    %28 = arith.cmpi sgt, %27, %11 : vector<8x8xi32>
    %c0_15 = arith.constant 0 : index
    %29 = arith.index_cast %c0_i32 : i32 to index
    %c0_16 = arith.constant 0 : index
    %c0_17 = arith.constant 0 : index
    %30 = vector.load %arg3[%c0_15, %29, %c0_16, %c0_17] : memref<1x1x128x8xf32, #tpu.memory_space<vmem>>, vector<1x1x32x8xf32>
    %31 = vector.shape_cast %30 : vector<1x1x32x8xf32> to vector<32x8xf32>
    %c0_18 = arith.constant 0 : index
    %32 = arith.index_cast %c0_i32 : i32 to index
    %c0_19 = arith.constant 0 : index
    %c0_20 = arith.constant 0 : index
    %33 = vector.load %arg4[%c0_18, %32, %c0_19, %c0_20] : memref<1x1x8x128xf32, #tpu.memory_space<vmem>>, vector<1x1x8x32xf32>
    %34 = vector.shape_cast %33 : vector<1x1x8x32xf32> to vector<8x32xf32>
    %cst_21 = arith.constant dense<0.000000e+00> : vector<8x8xf32>
    %35 = tpu.matmul %5, %31, %cst_21 {dimension_numbers = #tpu.dot_dimension_numbers<[1], [0], [0], [1], [0, 0, 1, 1], [], []>} : vector<8x32xf32>, vector<32x8xf32>, vector<8x8xf32> -> vector<8x8xf32>
    %cst_22 = arith.constant -1.000000e+30 : f32
    %36 = vector.broadcast %cst_22 : f32 to vector<8x8xf32>
    %37 = arith.select %28, %36, %35 : vector<8x8xi1>, vector<8x8xf32>
    %cst_23 = arith.constant dense<0xFF800000> : vector<8xf32>
    %38 = vector.multi_reduction <maximumf>, %37, %cst_23 [1] : vector<8x8xf32> to vector<8xf32>
    %39 = vector.shape_cast %38 : vector<8xf32> to vector<8x1xf32>
    %40 = arith.maximumf %13, %39 : vector<8x1xf32>
    %41 = arith.subf %13, %40 : vector<8x1xf32>
    %42 = math.exp %41 : vector<8x1xf32>
    %43 = vector.broadcast %40 : vector<8x1xf32> to vector<8x8xf32>
    %44 = arith.subf %37, %43 : vector<8x8xf32>
    %45 = math.exp %44 : vector<8x8xf32>
    %46 = arith.mulf %42, %17 : vector<8x1xf32>
    %cst_24 = arith.constant dense<0.000000e+00> : vector<8xf32>
    %47 = vector.multi_reduction <add>, %45, %cst_24 [1] : vector<8x8xf32> to vector<8xf32>
    %48 = vector.shape_cast %47 : vector<8xf32> to vector<8x1xf32>
    %49 = arith.addf %46, %48 : vector<8x1xf32>
    %50 = vector.broadcast %42 : vector<8x1xf32> to vector<8x32xf32>
    %51 = arith.mulf %50, %21 : vector<8x32xf32>
    %cst_25 = arith.constant dense<0.000000e+00> : vector<8x32xf32>
    %52 = tpu.matmul %45, %34, %cst_25 {dimension_numbers = #tpu.dot_dimension_numbers<[1], [0], [0], [1], [0, 0, 1, 1], [], []>} : vector<8x8xf32>, vector<8x32xf32>, vector<8x32xf32> -> vector<8x32xf32>
    %53 = arith.addf %51, %52 : vector<8x32xf32>
    %c0_26 = arith.constant 0 : index
    %54 = arith.index_cast %c0_i32 : i32 to index
    %c32 = arith.constant 32 : index
    %c0_27 = arith.constant 0 : index
    %55 = vector.load %arg3[%c0_26, %54, %c32, %c0_27] : memref<1x1x128x8xf32, #tpu.memory_space<vmem>>, vector<1x1x32x8xf32>
    %56 = vector.shape_cast %55 : vector<1x1x32x8xf32> to vector<32x8xf32>
    %c0_28 = arith.constant 0 : index
    %57 = arith.index_cast %c0_i32 : i32 to index
    %c0_29 = arith.constant 0 : index
    %c32_30 = arith.constant 32 : index
    %58 = vector.load %arg4[%c0_28, %57, %c0_29, %c32_30] : memref<1x1x8x128xf32, #tpu.memory_space<vmem>>, vector<1x1x8x32xf32>
    %59 = vector.shape_cast %58 : vector<1x1x8x32xf32> to vector<8x32xf32>
    %cst_31 = arith.constant dense<0.000000e+00> : vector<8x8xf32>
    %60 = tpu.matmul %6, %56, %cst_31 {dimension_numbers = #tpu.dot_dimension_numbers<[1], [0], [0], [1], [0, 0, 1, 1], [], []>} : vector<8x32xf32>, vector<32x8xf32>, vector<8x8xf32> -> vector<8x8xf32>
    %cst_32 = arith.constant -1.000000e+30 : f32
    %61 = vector.broadcast %cst_32 : f32 to vector<8x8xf32>
    %62 = arith.select %28, %61, %60 : vector<8x8xi1>, vector<8x8xf32>
    %cst_33 = arith.constant dense<0xFF800000> : vector<8xf32>
    %63 = vector.multi_reduction <maximumf>, %62, %cst_33 [1] : vector<8x8xf32> to vector<8xf32>
    %64 = vector.shape_cast %63 : vector<8xf32> to vector<8x1xf32>
    %65 = arith.maximumf %14, %64 : vector<8x1xf32>
    %66 = arith.subf %14, %65 : vector<8x1xf32>
    %67 = math.exp %66 : vector<8x1xf32>
    %68 = vector.broadcast %65 : vector<8x1xf32> to vector<8x8xf32>
    %69 = arith.subf %62, %68 : vector<8x8xf32>
    %70 = math.exp %69 : vector<8x8xf32>
    %71 = arith.mulf %67, %18 : vector<8x1xf32>
    %cst_34 = arith.constant dense<0.000000e+00> : vector<8xf32>
    %72 = vector.multi_reduction <add>, %70, %cst_34 [1] : vector<8x8xf32> to vector<8xf32>
    %73 = vector.shape_cast %72 : vector<8xf32> to vector<8x1xf32>
    %74 = arith.addf %71, %73 : vector<8x1xf32>
    %75 = vector.broadcast %67 : vector<8x1xf32> to vector<8x32xf32>
    %76 = arith.mulf %75, %22 : vector<8x32xf32>
    %cst_35 = arith.constant dense<0.000000e+00> : vector<8x32xf32>
    %77 = tpu.matmul %70, %59, %cst_35 {dimension_numbers = #tpu.dot_dimension_numbers<[1], [0], [0], [1], [0, 0, 1, 1], [], []>} : vector<8x8xf32>, vector<8x32xf32>, vector<8x32xf32> -> vector<8x32xf32>
    %78 = arith.addf %76, %77 : vector<8x32xf32>
    %c0_36 = arith.constant 0 : index
    %79 = arith.index_cast %c0_i32 : i32 to index
    %c64 = arith.constant 64 : index
    %c0_37 = arith.constant 0 : index
    %80 = vector.load %arg3[%c0_36, %79, %c64, %c0_37] : memref<1x1x128x8xf32, #tpu.memory_space<vmem>>, vector<1x1x32x8xf32>
    %81 = vector.shape_cast %80 : vector<1x1x32x8xf32> to vector<32x8xf32>
    %c0_38 = arith.constant 0 : index
    %82 = arith.index_cast %c0_i32 : i32 to index
    %c0_39 = arith.constant 0 : index
    %c64_40 = arith.constant 64 : index
    %83 = vector.load %arg4[%c0_38, %82, %c0_39, %c64_40] : memref<1x1x8x128xf32, #tpu.memory_space<vmem>>, vector<1x1x8x32xf32>
    %84 = vector.shape_cast %83 : vector<1x1x8x32xf32> to vector<8x32xf32>
    %cst_41 = arith.constant dense<0.000000e+00> : vector<8x8xf32>
    %85 = tpu.matmul %7, %81, %cst_41 {dimension_numbers = #tpu.dot_dimension_numbers<[1], [0], [0], [1], [0, 0, 1, 1], [], []>} : vector<8x32xf32>, vector<32x8xf32>, vector<8x8xf32> -> vector<8x8xf32>
    %cst_42 = arith.constant -1.000000e+30 : f32
    %86 = vector.broadcast %cst_42 : f32 to vector<8x8xf32>
    %87 = arith.select %28, %86, %85 : vector<8x8xi1>, vector<8x8xf32>
    %cst_43 = arith.constant dense<0xFF800000> : vector<8xf32>
    %88 = vector.multi_reduction <maximumf>, %87, %cst_43 [1] : vector<8x8xf32> to vector<8xf32>
    %89 = vector.shape_cast %88 : vector<8xf32> to vector<8x1xf32>
    %90 = arith.maximumf %15, %89 : vector<8x1xf32>
    %91 = arith.subf %15, %90 : vector<8x1xf32>
    %92 = math.exp %91 : vector<8x1xf32>
    %93 = vector.broadcast %90 : vector<8x1xf32> to vector<8x8xf32>
    %94 = arith.subf %87, %93 : vector<8x8xf32>
    %95 = math.exp %94 : vector<8x8xf32>
    %96 = arith.mulf %92, %19 : vector<8x1xf32>
    %cst_44 = arith.constant dense<0.000000e+00> : vector<8xf32>
    %97 = vector.multi_reduction <add>, %95, %cst_44 [1] : vector<8x8xf32> to vector<8xf32>
    %98 = vector.shape_cast %97 : vector<8xf32> to vector<8x1xf32>
    %99 = arith.addf %96, %98 : vector<8x1xf32>
    %100 = vector.broadcast %92 : vector<8x1xf32> to vector<8x32xf32>
    %101 = arith.mulf %100, %23 : vector<8x32xf32>
    %cst_45 = arith.constant dense<0.000000e+00> : vector<8x32xf32>
    %102 = tpu.matmul %95, %84, %cst_45 {dimension_numbers = #tpu.dot_dimension_numbers<[1], [0], [0], [1], [0, 0, 1, 1], [], []>} : vector<8x8xf32>, vector<8x32xf32>, vector<8x32xf32> -> vector<8x32xf32>
    %103 = arith.addf %101, %102 : vector<8x32xf32>
    %c0_46 = arith.constant 0 : index
    %104 = arith.index_cast %c0_i32 : i32 to index
    %c96 = arith.constant 96 : index
    %c0_47 = arith.constant 0 : index
    %105 = vector.load %arg3[%c0_46, %104, %c96, %c0_47] : memref<1x1x128x8xf32, #tpu.memory_space<vmem>>, vector<1x1x32x8xf32>
    %106 = vector.shape_cast %105 : vector<1x1x32x8xf32> to vector<32x8xf32>
    %c0_48 = arith.constant 0 : index
    %107 = arith.index_cast %c0_i32 : i32 to index
    %c0_49 = arith.constant 0 : index
    %c96_50 = arith.constant 96 : index
    %108 = vector.load %arg4[%c0_48, %107, %c0_49, %c96_50] : memref<1x1x8x128xf32, #tpu.memory_space<vmem>>, vector<1x1x8x32xf32>
    %109 = vector.shape_cast %108 : vector<1x1x8x32xf32> to vector<8x32xf32>
    %cst_51 = arith.constant dense<0.000000e+00> : vector<8x8xf32>
    %110 = tpu.matmul %8, %106, %cst_51 {dimension_numbers = #tpu.dot_dimension_numbers<[1], [0], [0], [1], [0, 0, 1, 1], [], []>} : vector<8x32xf32>, vector<32x8xf32>, vector<8x8xf32> -> vector<8x8xf32>
    %cst_52 = arith.constant -1.000000e+30 : f32
    %111 = vector.broadcast %cst_52 : f32 to vector<8x8xf32>
    %112 = arith.select %28, %111, %110 : vector<8x8xi1>, vector<8x8xf32>
    %cst_53 = arith.constant dense<0xFF800000> : vector<8xf32>
    %113 = vector.multi_reduction <maximumf>, %112, %cst_53 [1] : vector<8x8xf32> to vector<8xf32>
    %114 = vector.shape_cast %113 : vector<8xf32> to vector<8x1xf32>
    %115 = arith.maximumf %16, %114 : vector<8x1xf32>
    %116 = arith.subf %16, %115 : vector<8x1xf32>
    %117 = math.exp %116 : vector<8x1xf32>
    %118 = vector.broadcast %115 : vector<8x1xf32> to vector<8x8xf32>
    %119 = arith.subf %112, %118 : vector<8x8xf32>
    %120 = math.exp %119 : vector<8x8xf32>
    %121 = arith.mulf %117, %20 : vector<8x1xf32>
    %cst_54 = arith.constant dense<0.000000e+00> : vector<8xf32>
    %122 = vector.multi_reduction <add>, %120, %cst_54 [1] : vector<8x8xf32> to vector<8xf32>
    %123 = vector.shape_cast %122 : vector<8xf32> to vector<8x1xf32>
    %124 = arith.addf %121, %123 : vector<8x1xf32>
    %125 = vector.broadcast %117 : vector<8x1xf32> to vector<8x32xf32>
    %126 = arith.mulf %125, %24 : vector<8x32xf32>
    %cst_55 = arith.constant dense<0.000000e+00> : vector<8x32xf32>
    %127 = tpu.matmul %120, %109, %cst_55 {dimension_numbers = #tpu.dot_dimension_numbers<[1], [0], [0], [1], [0, 0, 1, 1], [], []>} : vector<8x8xf32>, vector<8x32xf32>, vector<8x32xf32> -> vector<8x32xf32>
    %128 = arith.addf %126, %127 : vector<8x32xf32>
    %c1_i32 = arith.constant 1 : i32
    %129 = vector.broadcast %49 : vector<8x1xf32> to vector<8x32xf32>
    %130 = arith.divf %53, %129 : vector<8x32xf32>
    %131 = vector.broadcast %74 : vector<8x1xf32> to vector<8x32xf32>
    %132 = arith.divf %78, %131 : vector<8x32xf32>
    %133 = vector.broadcast %99 : vector<8x1xf32> to vector<8x32xf32>
    %134 = arith.divf %103, %133 : vector<8x32xf32>
    %135 = vector.broadcast %124 : vector<8x1xf32> to vector<8x32xf32>
    %136 = arith.divf %128, %135 : vector<8x32xf32>
    %137 = tpu.concatenate %130, %132, %134, %136 in 1 : vector<8x32xf32>, vector<8x32xf32>, vector<8x32xf32>, vector<8x32xf32> -> vector<8x128xf32>
    %c0_56 = arith.constant 0 : index
    %c0_57 = arith.constant 0 : index
    %c0_58 = arith.constant 0 : index
    %138 = vector.load %arg5[%c0_56, %c0_57, %c0_58] : memref<1x8x128xf32, #tpu.memory_space<vmem>>, vector<1x8x128xf32>
    %139 = vector.shape_cast %138 : vector<1x8x128xf32> to vector<8x128xf32>
    %140 = vector.shape_cast %137 : vector<8x128xf32> to vector<1x8x128xf32>
    tpu.vector_store %arg5[%c0_56, %c0_57, %c0_58], %140 {strides = array<i32>} : memref<1x8x128xf32, #tpu.memory_space<vmem>>, vector<1x8x128xf32>,
    return
  }
  func.func @transform_0(%arg0: i32, %arg1: i32) -> (i32, i32, i32) {
    %c0_i32 = arith.constant 0 : i32
    %c0_i32_0 = arith.constant 0 : i32
    return %arg0, %arg1, %c0_i32 : i32, i32, i32
  }
  func.func @transform_1(%arg0: i32, %arg1: i32) -> (i32, i32, i32, i32) {
    %c0_i32 = arith.constant 0 : i32
    %c0_i32_0 = arith.constant 0 : i32
    %c0_i32_1 = arith.constant 0 : i32
    %c0_i32_2 = arith.constant 0 : i32
    return %arg0, %c0_i32, %c0_i32_0, %c0_i32_1 : i32, i32, i32, i32
  }
  func.func @transform_2(%arg0: i32, %arg1: i32) -> (i32, i32, i32, i32) {
    %c0_i32 = arith.constant 0 : i32
    %c0_i32_0 = arith.constant 0 : i32
    %c0_i32_1 = arith.constant 0 : i32
    %c0_i32_2 = arith.constant 0 : i32
    return %arg0, %c0_i32, %c0_i32_0, %c0_i32_1 : i32, i32, i32, i32
  }
  func.func @transform_3(%arg0: i32, %arg1: i32) -> (i32, i32, i32) {
    %c0_i32 = arith.constant 0 : i32
    %c0_i32_0 = arith.constant 0 : i32
    return %arg0, %arg1, %c0_i32 : i32, i32, i32
  }
}

</mosaic_0001>

<bundles_post_ra>
// kernel: tpu_custom_call.1
= control target key start
LH: loop header
LB: loop body
LE: loop exit
PB: predicated region body
PF: predicated region fallthrough
CT: control target
= control target key end

     0   :  { %8 = vsyncpa [#allocation3], 0  ;;  %s1622_s0 = inlined_call_operand.vmem [shape: f32[2,8,128], index: 0, kind: input, shape index: {}]   ;;  %s1623_s1 = inlined_call_operand.vmem [shape: f32[2,1,128,8], index: 1, kind: input, shape index: {}]   ;;  %s1624_s2 = inlined_call_operand.vmem [shape: f32[2,1,8,128], index: 2, kind: input, shape index: {}]   ;;  %s1625_s3 = inlined_call_operand.hbm [shape: f32[2,8,128], index: 3, kind: output, shape index: {}]  }
   0x1   :  { %10 = vsyncpa [#allocation3 + $0x1], 0  ;;  %s1389_s12 = smov 0   ;;  %s1391_s13 = smov 0  }
   0x2   :  { %s1393_s14 = smov 0   ;;  %s1395_s15 = smov 0  }
   0x3   :  { %s1397_s16 = smov 0   ;;  %s1399_s17 = smov 0  }
   0x4 LB: > { %s1058_s18 = sadd.s32 4294967295, %s1360_s17   ;;  %s1059_s19 = sadd.s32 4294967294, %s1360_s17   ;;  %s1360_s17 = sphi %s1399_s17, %s16_s17   ;;  %s1356_s16 = sphi %s1397_s16, %s1632_s16   ;;  %s1352_s15 = sphi %s1395_s15, %s1631_s15   ;;  %s1348_s14 = sphi %s1393_s14, %s1630_s14   ;;  %s1344_s13 = sphi %s1391_s13, %s1629_s13   ;;  %s1340_s12 = sphi %s1389_s12, %s1628_s12  }
   0x5   : > { %s28_s20 = sadd.s32 1, %s1356_s16  ;;  %s117_s21 = sadd.s32 1, %s1348_s14 }
   0x6   : > { %p30_p0 = scmp.ge.s32.totalorder %s28_s20, 2  ;;  %p127_p1 = scmp.ne.s32.totalorder %s1348_s14, %s1344_s13 }
   0x7   : > { %p128_p2 = scmp.eq.s32.totalorder %s1058_s18, 1  ;;  %p133_p3 = scmp.ne.s32.totalorder %s1344_s13, %s1340_s12 }
   0x8   : > { %s1634_s20 = smov (%p30_p0, %s28_s20), 0  ;;  %p134_p5 = scmp.eq.s32.totalorder %s1059_s19, 1 }
   0x9   : > { %p1429_p4 = por %p128_p2, %p127_p1  ;;  %s112_s23 = ssub.s32 %s1356_s16, %s1634_s20 }
   0xa   : > { %p1062_p6 = scmp.ge.s32.totalorder %s1360_s17, 1  ;;  %p115_p7 = scmp.eq.s32.totalorder %s112_s23, 0 }
   0xb   : > { %p1436_p8 = por %p134_p5, %p133_p3  ;;  %p177_p9 = scmp.lt.s32.totalorder %s1360_s17, 3 }
   0xc   : > { %s1442_s25 = scalar_select %p115_p7, %s1348_s14, %s117_s21  }
   0xd   : > { %p178_p10 = pnand %p1062_p6, %p177_p9 }
   0xe   : > { %p212_p11 = scmp.lt.s32.totalorder (!%p178_p10), %s1352_s15, 1  ;;  %v1362_v0 = vmov (!%p178_p10), 0.0|0.0   ;;  %vm1363_vm0 = vmmov (!%p178_p10), 0   ;;  %v1364_v1 = vmov (!%p178_p10), 0.0   ;;  %vm243_vm1 = vcmask (!%p178_p10), 261120   ;;  %s1365_s8 = smov (!%p178_p10), 64  }
   0xf   : > { %181 = sbr.rel (%p178_p10) target bundleno = 1525 (0x5f5), region = 32  ;;  %1173 = vmatprep.subr.bf16.mxu0 (!%p178_p10), %v1362_v0  ;;  %1117 = vmatprep.mubr.msk.f32.mxu0 (!%p178_p10), %vm1363_vm0, %v1364_v1  ;;  %v231_v10 = vlaneseq (!%p178_p10)  ;;  %vm318_vm3 = vcmask (!%p178_p10), 64512   ;;  %s1366_s18 = smov (!%p178_p10), 96   ;;  %vm943_vm4 = vcmask (!%p178_p10), 523264   ;;  %vm945_vm5 = vcmask (!%p178_p10), 785408  }
  0x10   : > { %1120 = vmatprep.subr.mxu1 (!%p178_p10), %v1364_v1  ;;  %1122 = vmatprep.mubr.msk.f32.mxu1 (!%p178_p10), %vm1363_vm0, %v1364_v1  ;;  %s1367_s19 = smov (!%p178_p10), 32   ;;  %s209_s21 = sand.u32 (!%p178_p10), 1, %s1344_s13  }
  0x11   : > { %v1480_v11 = vshrl.u32 (!%p178_p10), %v231_v10, 7  ;;  %v1482_v12 = vand.u32 (!%p178_p10), 127, %v231_v10  ;;  %s1063_s23 = sshll.u32 (!%p178_p10), %s209_s21, 3  ;;  %s949_s5 = scalar_lea.sflag (!%p178_p10), [#allocation3], %s209_s21 }
  0x12   : > { %s1368_s6 = smov (!%p178_p10), [#allocation2]  }
  0x13   : > { %vm237_vm2 = vcmp.gt.s32.totalorder (!%p178_p10), %v1482_v12, %v1480_v11 }
  0x16   : > { %s1449_s26 = scalar_select %p212_p11, %s1352_s15, 1 }
  0x18   : > { %s1080_s27 = sshll.u32 %s1449_s26, 7  ;;  %s1064_s28 = sshll.u32 %s1449_s26, 3 }
  0x19   : > { %s1459_s4 = scalar_lea.vmem %s1623_s1, %s1080_s27  ;;  %s218_s7 = scalar_lea.vmem %s1622_s0, %s1064_s28 }
  0x1a   : > { %v238_v2 = vld [vmem:[%s1459_s4] sm:$0xff]  ;;  %v239_v3 = vld [vmem:[%s1459_s4 + $0x8] sm:$0xff]  ;;  %v240_v4 = vld [vmem:[%s1459_s4 + $0x10] sm:$0xff]  ;;  %s227_s11 = scalar_lea.vmem %s1624_s2, %s1064_s28  ;;  %s1077_s26 = sshll.u32 %s1352_s15, 7 }
  0x1b   : > { %v1174_v5 = vpack.c.bf16 %v239_v3, %v238_v2  ;;  %v241_v6 = vld [vmem:[%s1459_s4 + $0x18] sm:$0xff]  ;;  %v229_v8 = vld [vmem:[%s218_s7] sm:$0xff]  ;;  %v409_v23 = vld [vmem:[%s1459_s4 + $0x28] sm:$0xff]  ;;  %s211_s27 = scalar_lea.vmem [#allocation2], %s1063_s23  ;;  %s1286_s7 = sshll.u32 %s1368_s6, 4  ;;  %s1287_s7 = int_to_ptr.vmem [resolvable:$false] %s1286_s7 }
  0x1c   : > { %v1177_v7 = vpack.c.bf16 %v241_v6, %v240_v4  ;;  %v1471_v9 = vmul.f32 0.17677669, %v229_v8  ;;  %v242_v17 = vld [vmem:[%s227_s11] sm:$0xff]  ;;  %v410_v25 = vld [vmem:[%s1459_s4 + $0x30] sm:$0xff]  ;;  %v411_v26 = vld [vmem:[%s1459_s4 + $0x38] sm:$0xff]  ;;  %s963_s28 = sshll.u32 %s211_s27, 4  ;;  %s1577_s28 = int_to_ptr.vmem [resolvable:$true] %s963_s28 }
  0x1d   : > { %1175 = vmatpush3.bf16.msra.mxu0 %v1174_v5  ;;  %1121 = vmatpush3.msra.mxu1 %v242_v17  ;;  %v408_v22 = vld [vmem:[%s1459_s4 + $0x20] sm:$0xff]  ;;  %v1183_v28 = vpack.c.bf16 %v411_v26, %v410_v25  ;;  %v581_v30 = vld [vmem:[%s1459_s4 + $0x48] sm:$0xff]  ;;  %v582_v33 = vld [vmem:[%s1459_s4 + $0x50] sm:$0xff]  ;;  %s1282_s15 = scalar_lea.vmem %s1577_s28, 128  ;;  %p1289_p1 = scmp.lt.s32.totalorder %s1577_s28, %s1287_s7 }
  0x1e   : > { %1176 = vmatprep.subr.bf16.mxu0 %v1362_v0  ;;  %584 = vrot.lane.b32.xlu1 %v1471_v9, %s1365_s8  ;;  %v1180_v24 = vpack.c.bf16 %v409_v23, %v408_v22  ;;  %v580_v29 = vld [vmem:[%s1459_s4 + $0x40] sm:$0xff]  ;;  %v583_v34 = vld [vmem:[%s1459_s4 + $0x58] sm:$0xff]  ;;  %v752_v4 = vld [vmem:[%s1459_s4 + $0x68] sm:$0xff]  ;;  %p1283_p12 = scmp.ne.s32.totalorder %s1577_s28, %s1282_s15 }
  0x1f   : > { %1179 = vmatprep.subr.bf16.mxu1 %v1362_v0  ;;  %v1186_v32 = vpack.c.bf16 %v581_v30, %v580_v29  ;;  %v1189_v35 = vpack.c.bf16 %v583_v34, %v582_v33  ;;  %v751_v3 = vld [vmem:[%s1459_s4 + $0x60] sm:$0xff]  ;;  %v753_v6 = vld [vmem:[%s1459_s4 + $0x70] sm:$0xff] }
  0x20   : > { %v1192_v5 = vpack.c.bf16 %v752_v4, %v751_v3  ;;  %p1284_p13 = pnand %p1283_p12, %p1429_p4 }
  0x21   : > { %1178 = vmatpush3.bf16.msra.mxu0 %v1177_v7  ;;  %v754_v7 = vld [vmem:[%s1459_s4 + $0x78] sm:$0xff]  ;;  %s1575_s4 = scalar_lea.hbm %s1625_s3, %s1077_s26 }
  0x22   : > { %1136 = vmatprep.subr.mxu0 %v1364_v1  ;;  %p1285_p0 = pneg %p1284_p13 }
  0x24   : > { %1118 = vmatmul.mubr.msk.f32.vlgmr.msra.gmra.mrb[0].mxu0 %vm243_vm1, %v1471_v9 }
  0x25   : > { %1138 = vmatprep.mubr.msk.f32.mxu0 %vm1363_vm0, %v1364_v1 }
  0x90   : > { %v585_v36 = vpop.permute.xlu1 %584 }
  0xf7   : > { %v313_v13 = vpop.f32.mrb[0].mxu0 }
  0xf8   : > { %v317_v14 = vsel %vm237_vm2, -1e+30, %v313_v13  ;;  %v1119_v15 = vpop.f32.mrb[1].mxu0 }
  0xf9   : > { %v319_v16 = vsel %vm318_vm3, %v317_v14, -inf }
  0xfa   : > { %320 = vmax.xlane.f32.xlu0 %v319_v16 }
 0x110   : > { %412 = vrot.lane.b32.xlu0 %v1471_v9, %s1366_s18 }
 0x187   : > { %v321_v18 = vpop.xlane.xlu0 %320 }
 0x188   : > { %v322_v19 = vmax.f32 %v321_v18, -1e+30 }
 0x18a   : > { %v326_v20 = vsub.f32 %v317_v14, %v322_v19  ;;  %v323_v37 = vsub.f32 -1e+30, %v322_v19 }
 0x18b   : > { %v413_v31 = vpop.permute.xlu0 %412 }
 0x18c   : > { %v327_v21 = vmul.f32 1.442695, %v326_v20  ;;  %v324_v38 = vmul.f32 1.442695, %v323_v37 }
 0x18e   : > { %1258 = vpow2.f32 %v327_v21 }
 0x18f   : > { %1260 = vpow2.f32 %v324_v38 }
 0x198   : > { %v1502_v27 = vpop.eup %1258 }
 0x199   : > { %1123 = vmatmul.mubr.msk.f32.vlgmr.msra.gmra.mrb[0].mxu1 %vm318_vm3, %v1502_v27  ;;  %v1261_v39 = vpop.eup %1260 }
 0x19a   : > { %1181 = vmatpush3.bf16.msra.mxu1 %v1180_v24  ;;  %1133 = vmatprep.mubr.msk.f32.mxu1 %vm1363_vm0, %v1364_v1  ;;  %v1522_v40 = vmul.f32 0.0, %v1261_v39 }
 0x19b   : > { %1182 = vmatprep.subr.bf16.mxu1 %v1362_v0 }
 0x19e   : > { %1184 = vmatpush3.bf16.msra.mxu1 %v1183_v28 }
 0x19f   : > { %1185 = vmatprep.subr.bf16.mxu1 %v1362_v0 }
 0x1a1   : > { %1134 = vmatmul.mubr.msk.f32.vlgmr.msra.gmra.mrb[2].mxu1 %vm243_vm1, %v413_v31 }
 0x1a2   : > { %1187 = vmatpush3.bf16.msra.mxu1 %v1186_v32  ;;  %1149 = vmatprep.mubr.msk.f32.mxu1 %vm1363_vm0, %v1364_v1 }
 0x1a3   : > { %1188 = vmatprep.subr.bf16.mxu1 %v1362_v0 }
 0x1a6   : > { %1190 = vmatpush3.bf16.msra.mxu1 %v1189_v35 }
 0x1a7   : > { %1168 = vmatprep.subr.mxu1 %v1364_v1 }
 0x1a9   : > { %1150 = vmatmul.mubr.msk.f32.vlgmr.msra.gmra.mrb[4].mxu1 %vm243_vm1, %v585_v36 }
 0x1aa   : > { %1170 = vmatprep.mubr.msk.f32.mxu1 %vm1363_vm0, %v1364_v1 }
 0x26c   : > { %v403_v41 = vpop.f32.mrb[0].mxu1 }
 0x26d   : > { %v1525_v42 = vadd.f32 %v403_v41, %v1522_v40  ;;  %v1124_v43 = vpop.f32.mrb[1].mxu1 }
 0x274   : > { %v482_v44 = vpop.f32.mrb[2].mxu1 }
 0x275   : > { %v486_v45 = vsel %vm237_vm2, -1e+30, %v482_v44  ;;  %v1135_v46 = vpop.f32.mrb[3].mxu1 }
 0x276   : > { %v487_v47 = vsel %vm318_vm3, %v486_v45, -inf }
 0x277   : > { %488 = vmax.xlane.f32.xlu1 %v487_v47 }
 0x27c   : > { %v654_v48 = vpop.f32.mrb[4].mxu1 }
 0x27d   : > { %v658_v49 = vsel %vm237_vm2, -1e+30, %v654_v48  ;;  %v1151_v50 = vpop.f32.mrb[5].mxu1 }
 0x27e   : > { %v659_v51 = vsel %vm318_vm3, %v658_v49, -inf }
 0x27f   : > { %660 = vmax.xlane.f32.xlu0 %v659_v51 }
 0x288   : > { %503 = vrot.lane.b32.xlu1 %v242_v17, %s1366_s18 }
 0x28c   : > { %755 = vrot.lane.b32.xlu1 %v1471_v9, %s1367_s19  ;;  %v1195_v9 = vpack.c.bf16 %v754_v7, %v753_v6 }
 0x295   : > { %674 = vrot.lane.b32.xlu0 %v242_v17, %s1365_s8 }
 0x299   : > { %845 = vrot.lane.b32.xlu0 %v242_v17, %s1367_s19 }
 0x304   : > { %v489_v52 = vpop.xlane.xlu1 %488 }
 0x305   : > { %v490_v53 = vmax.f32 %v489_v52, -1e+30 }
 0x307   : > { %v494_v54 = vsub.f32 %v486_v45, %v490_v53  ;;  %v491_v13 = vsub.f32 -1e+30, %v490_v53  ;;  %v330_v45 = vsel %vm318_vm3, %v1502_v27, 0.0 }
 0x308   : > { %v504_v55 = vpop.permute.xlu1 %503 }
 0x309   : > { %v495_v56 = vmul.f32 1.442695, %v494_v54  ;;  %1137 = vmatpush3.msra.mxu0 %v504_v55  ;;  %v492_v14 = vmul.f32 1.442695, %v491_v13 }
 0x30a   : > { %1152 = vmatprep.subr.mxu0 %v1364_v1 }
 0x30b   : > { %1262 = vpow2.f32 %v495_v56 }
 0x30c   : > { %v661_v57 = vpop.xlane.xlu0 %660  ;;  %v756_v10 = vpop.permute.xlu1 %755 }
 0x30d   : > { %v662_v58 = vmax.f32 %v661_v57, -1e+30 }
 0x30f   : > { %v666_v59 = vsub.f32 %v658_v49, %v662_v58  ;;  %v663_v17 = vsub.f32 -1e+30, %v662_v58 }
 0x310   : > { %v675_v60 = vpop.permute.xlu0 %674 }
 0x311   : > { %v667_v61 = vmul.f32 1.442695, %v666_v59  ;;  %v664_v20 = vmul.f32 1.442695, %v663_v17 }
 0x313   : > { %1264 = vpow2.f32 %v667_v61 }
 0x314   : > { %v846_v62 = vpop.permute.xlu0 %845  ;;  %1266 = vpow2.f32 %v492_v14 }
 0x315   : > { %1169 = vmatpush3.msra.mxu1 %v846_v62  ;;  %v1263_v63 = vpop.eup %1262 }
 0x316   : > { %1139 = vmatmul.mubr.msk.f32.vlgmr.msra.gmra.mrb[2].mxu0 %vm318_vm3, %v1263_v63  ;;  %v498_v2 = vsel %vm318_vm3, %v1263_v63, 0.0 }
 0x317   : > { %499 = vadd.xlane.f32.xlu0 %v498_v2  ;;  %1153 = vmatpush3.msra.mxu0 %v675_v60 }
 0x318   : > { %1154 = vmatprep.mubr.msk.f32.mxu0 %vm1363_vm0, %v1364_v1  ;;  %1191 = vmatprep.subr.bf16.mxu0 %v1362_v0 }
 0x31d   : > { %v1265_v8 = vpop.eup %1264 }
 0x31e   : > { %1155 = vmatmul.mubr.msk.f32.vlgmr.msra.gmra.mrb[4].mxu0 %vm318_vm3, %v1265_v8  ;;  %v1267_v15 = vpop.eup %1266  ;;  %v670_v34 = vsel %vm318_vm3, %v1265_v8, 0.0 }
 0x31f   : > { %1193 = vmatpush3.bf16.msra.mxu0 %v1192_v5  ;;  %1165 = vmatprep.mubr.msk.f32.mxu0 %vm1363_vm0, %v1364_v1  ;;  %v497_v18 = vmul.f32 0.0, %v1267_v15 }
 0x320   : > { %1194 = vmatprep.subr.bf16.mxu0 %v1362_v0 }
 0x323   : > { %1196 = vmatpush3.bf16.msra.mxu0 %v1195_v9 }
 0x326   : > { %1166 = vmatmul.mubr.msk.f32.vlgmr.msra.gmra.mrb[6].mxu0 %vm243_vm1, %v756_v10 }
 0x3a4   : > { %v500_v16 = vpop.xlane.xlu0 %499 }
 0x3a5   : > { %v501_v19 = vadd.f32 %v500_v16, %v497_v18 }
 0x3a7   : > { %1268 = vrcp.f32 %v501_v19 }
 0x3a8   : > { %1270 = vpow2.f32 %v664_v20 }
 0x3b1   : > { %v1269_v23 = vpop.eup %1268 }
 0x3b2   : > { %v1271_v24 = vpop.eup %1270 }
 0x3b3   : > { %v669_v25 = vmul.f32 0.0, %v1271_v24 }
 0x3e9   : > { %v575_v21 = vpop.f32.mrb[2].mxu0 }
 0x3ea   : > { %v579_v22 = vadd.f32 %v575_v21, %v497_v18  ;;  %v1140_v1 = vpop.f32.mrb[3].mxu0 }
 0x3ec   : > { %v925_v0 = vmul.f32 %v1269_v23, %v579_v22 }
 0x3f1   : > { %v746_v26 = vpop.f32.mrb[4].mxu0 }
 0x3f2   : > { %v750_v28 = vadd.f32 %v746_v26, %v669_v25  ;;  %v1156_v29 = vpop.f32.mrb[5].mxu0 }
 0x3f9   : > { %v825_v30 = vpop.f32.mrb[6].mxu0 }
 0x3fa   : > { %v829_v31 = vsel %vm237_vm2, -1e+30, %v825_v30  ;;  %v1167_v32 = vpop.f32.mrb[7].mxu0 }
 0x3fb   : > { %v830_v33 = vsel %vm318_vm3, %v829_v31, -inf }
 0x3fc   : > { %831 = vmax.xlane.f32.xlu1 %v830_v33 }
 0x400   : > { %671 = vadd.xlane.f32.xlu1 %v670_v34 }
 0x489   : > { %v832_v35 = vpop.xlane.xlu1 %831 }
 0x48a   : > { %v833_v36 = vmax.f32 %v832_v35, -1e+30 }
 0x48c   : > { %v837_v37 = vsub.f32 %v829_v31, %v833_v36  ;;  %v834_v51 = vsub.f32 -1e+30, %v833_v36 }
 0x48d   : > { %v672_v38 = vpop.xlane.xlu1 %671 }
 0x48e   : > { %v838_v39 = vmul.f32 1.442695, %v837_v37  ;;  %v673_v41 = vadd.f32 %v672_v38, %v669_v25  ;;  %v835_v52 = vmul.f32 1.442695, %v834_v51 }
 0x490   : > { %1272 = vpow2.f32 %v838_v39 }
 0x491   : > { %1274 = vrcp.f32 %v673_v41 }
 0x49a   : > { %v1273_v43 = vpop.eup %1272 }
 0x49b   : > { %v1275_v44 = vpop.eup %1274  ;;  %1171 = vmatmul.mubr.msk.f32.vlgmr.msra.gmra.mrb[6].mxu1 %vm318_vm3, %v1273_v43  ;;  %v841_v11 = vsel %vm318_vm3, %v1273_v43, 0.0 }
 0x49c   : > { %842 = vadd.xlane.f32.xlu1 %v841_v11  ;;  %v927_v12 = vmul.f32 %v1275_v44, %v750_v28 }
 0x49e   : > { %935 = vrot.lane.b32.xlu0 %v927_v12, %s1365_s8  ;;  %s1288_s8 = scalar_lea.vmem %s1287_s7, 256 }
 0x49f   : > { %p1290_p2 = scmp.lt.s32.totalorder %s1288_s8, %s1282_s15 }
 0x4a0   : > { %331 = vadd.xlane.f32.xlu1 %v330_v45 }
 0x4a1   : > { %p1291_p3 = por %p1290_p2, %p1289_p1 }
 0x4a3   : > { %p1292_p5 = pnand %p1291_p3, %p1285_p0 }
 0x4b1   : > { %931 = vrot.lane.b32.xlu1 %v925_v0, %s1367_s19 }
 0x510   : > { %v936_v60 = vpop.permute.xlu0 %935 }
 0x529   : > { %v843_v46 = vpop.xlane.xlu1 %842 }
 0x52d   : > { %v332_v47 = vpop.xlane.xlu1 %331 }
 0x52e   : > { %v333_v48 = vadd.f32 %v332_v47, %v1522_v40 }
 0x530   : > { %1276 = vrcp.f32 %v333_v48 }
 0x531   : > { %1278 = vpow2.f32 %v835_v52  ;;  %v932_v40 = vpop.permute.xlu1 %931 }
 0x53a   : > { %v1277_v49 = vpop.eup %1276 }
 0x53b   : > { %v923_v50 = vmul.f32 %v1277_v49, %v1525_v42  ;;  %v1279_v53 = vpop.eup %1278 }
 0x53c   : > { %v840_v54 = vmul.f32 0.0, %v1279_v53 }
 0x53d   : > { %v942_v42 = vsel %vm243_vm1, %v923_v50, %v932_v40 }
 0x53e   : > { %v844_v55 = vadd.f32 %v843_v46, %v840_v54  ;;  %v944_v61 = vsel %vm943_vm4, %v942_v42, %v936_v60 }
 0x540   : > { %1280 = vrcp.f32 %v844_v55 }
 0x54a   : > { %v1281_v58 = vpop.eup %1280 }
 0x56e   : > { %v917_v27 = vpop.f32.mrb[6].mxu1 }
 0x56f   : > { %v921_v56 = vadd.f32 %v917_v27, %v840_v54  ;;  %v1172_v57 = vpop.f32.mrb[7].mxu1 }
 0x571   : > { %v929_v59 = vmul.f32 %v1281_v58, %v921_v56 }
 0x573   : > { %939 = vrot.lane.b32.xlu1 %v929_v59, %s1366_s18 }
 0x5e5   : > { %v940_v62 = vpop.permute.xlu1 %939 }
 0x5e6   : > { %v946_v63 = vsel %vm945_vm5, %v944_v61, %v940_v62 }
 0x5e7   : > { %947 = vst [vmem:[%s211_s27] sm:$0xff] %v946_v63 }
 0x5e8   : > { %1295 = shalt.err (!%p1292_p5)
}
 0x5e9   : > { %s1296_s9 = scalar_lea.hbm %s1575_s4, 128  ;;  %s1300_s18 = scalar_lea.hbm %s1625_s3, 256 }
 0x5ea   : > { %p1297_p6 = scmp.ne.s32.totalorder %s1575_s4, %s1296_s9  ;;  %p1301_p10 = scmp.lt.u32.totalorder %s1575_s4, %s1625_s3 }
 0x5eb   : > { %p1302_p11 = scmp.lt.u32.totalorder %s1300_s18, %s1296_s9  ;;  %p1304_p13 = scmp.lt.u32.totalorder %s1296_s9, %s1575_s4 }
 0x5ec   : > { %p1298_p7 = pnand %p1297_p6, %p1429_p4 }
 0x5ed   : > { %p1303_p12 = por %p1302_p11, %p1301_p10 }
 0x5ee   : > { %p1299_p9 = pneg %p1298_p7 }
 0x5ef   : > { %p1305_p0 = por %p1304_p13, %p1303_p12 }
 0x5f1   : > { %p1306_p1 = pnand %p1305_p0, %p1299_p9 }
 0x5f3   : > { %1309 = shalt.err (!%p1306_p1)
}
 0x5f4   : > { %1197 = dma.vmem_to_hbm [thread:$0]  (%p1429_p4), %s1577_s28, 128, %s1575_s4, %s949_s5  }
 0x5f5 PF: > { %p1203_p2 = scmp.ge.s32.totalorder %s1360_s17, 2  ;;  %s975_s23 = sand.u32 1, %s1340_s12  }
 0x5f6   : > { %s976_s26 = scalar_lea.sflag [#allocation3], %s975_s23 }
 0x5f7   : > { %p1200_p3 = pnand %p1203_p2, %p1436_p8 }
 0x5f9   : > { %1335 = dma.done.wait (!%p1200_p3), %s976_s26, 128  }
 0x5fa   : > { %1337 = vsyncadd (!%p1200_p3), %s976_s26, 4294967168  ;;  %s16_s17 = sadd.s32 1, %s1360_s17   ;;  %s1628_s12 = smov %s1344_s13 }
 0x5fb   : > { %p13_p5 = scmp.ge.s32.totalorder %s16_s17, 4   ;;  %s1629_s13 = smov %s1348_s14 }
 0x5fc   : > { %s1630_s14 = smov %s1442_s25  ;;  %s1631_s15 = smov %s1356_s16 }
 0x5fd   : > { %s1632_s16 = smov %s1634_s20  ;;  %15 = sbr.rel (!%p13_p5) target bundleno = 4 (0x4), region = 73 }
 0x604   :  { %981 = vsyncpa [#allocation3], 1 }
 0x605   :  { %983 = vsyncpa [#allocation3 + $0x1], 1 }

</bundles_post_ra>
